<compile_context>
chip_gen: v5e
topology: v5e:2x2
jax: 0.10.0
libtpu: 0.0.40
codegen_flags: <defaults>
</compile_context>

<pallas_src>
import functools

import jax
import jax.numpy as jnp
from jax.experimental import pallas as pl
from jax.experimental.pallas import tpu as pltpu


def mhsa_kernel(x_ref, wqkv_ref, bqkv_ref, wp_ref, bp_ref, o_ref,
                q_scr, k_scr, v_scr, ctx_scr,
                *, batch, seq, num_heads, head_dim, embed_dim):
    """Whole-batch MHSA in one grid step.

    x_ref    : (B*N, E) f32        wqkv_ref : (E, 3E) bf16 (Q cols pre-scaled)
    bqkv_ref : (1, 3E) f32         wp_ref   : (E, E)  bf16
    bp_ref   : (1, E)  f32         o_ref    : (B*N, E) f32
    q/k/v_scr: (B*H, N, D) f32     ctx_scr  : (B*N, E) f32
    """
    B, N, H, D, E = batch, seq, num_heads, head_dim, embed_dim

    # --- fused QKV projection: one lane-dense (B*N,E)@(E,3E) MXU matmul -----
    x = x_ref[...].astype(jnp.bfloat16)                        # cast once
    qkv = jnp.dot(x, wqkv_ref[...],
                  preferred_element_type=jnp.float32)          # (BN, 3E) f32
    qkv = qkv + bqkv_ref[...]            # f32 bias add; Q third pre-scaled by 1/sqrt(D)

    # --- head split: (BN, 3E) -> head-major (B*H, N, D) via static slices ---
    # (scratch copies instead of a 4-D transpose; negligible cost at this size)
    for b in range(B):
        rows = slice(b * N, (b + 1) * N)
        for h in range(H):
            g = b * H + h
            q_scr[g] = qkv[rows, 0 * E + h * D:0 * E + (h + 1) * D]
            k_scr[g] = qkv[rows, 1 * E + h * D:1 * E + (h + 1) * D]
            v_scr[g] = qkv[rows, 2 * E + h * D:2 * E + (h + 1) * D]

    q = q_scr[...].astype(jnp.bfloat16)                        # (G, N, D), cast once each
    k = k_scr[...].astype(jnp.bfloat16)
    v = v_scr[...].astype(jnp.bfloat16)

    # --- attention, batched over G = B*H; softmax math stays in f32 ---------
    s = jnp.einsum('gnd,gmd->gnm', q, k,
                   preferred_element_type=jnp.float32)         # (G, N, N) f32
    m = jnp.max(s, axis=-1, keepdims=True)
    p = jnp.exp(s - m)
    denom = jnp.sum(p, axis=-1, keepdims=True)                 # (G, N, 1)
    # TODO(synk): attention dropout is the identity here (inference / eval mode).
    acc = jnp.einsum('gnm,gmd->gnd', p.astype(jnp.bfloat16), v,
                     preferred_element_type=jnp.float32)       # (G, N, D) f32
    # Deferred softmax normalization on the EUP.  approx=True is fine at small
    # N; revisit approx=False (or a Newton step) if sequence length scales.
    o_h = acc * pl.reciprocal(denom, approx=True)

    # --- merge heads back to (BN, E), then ONE (BN,E)@(E,E) projection ------
    for b in range(B):
        rows = slice(b * N, (b + 1) * N)
        for h in range(H):
            ctx_scr[rows, h * D:(h + 1) * D] = o_h[b * H + h]

    out = jnp.dot(ctx_scr[...].astype(jnp.bfloat16), wp_ref[...],
                  preferred_element_type=jnp.float32) + bp_ref[...]
    o_ref[...] = out.astype(o_ref.dtype)                       # lane-dense store (E=128)


def transformer_encoder(x, w_qkv, b_qkv, w_proj, b_proj, *, num_heads):
    """x: (B, N, E); w_qkv: (E, 3E); b_qkv: (1, 3E); w_proj: (E, E); b_proj: (1, E)."""
    B, N, E = x.shape
    assert E % num_heads == 0
    H = num_heads
    D = E // H
    BN, G = B * N, B * H

    # --- host-side layout / constant folding (done once, outside the kernel) -
    # Fold 1/sqrt(D) into the Q third of the packed QKV weight and bias.
    scale = D ** (-0.5)
    col_scale = jnp.concatenate([jnp.full((E,), scale, jnp.float32),
                                 jnp.ones((2 * E,), jnp.float32)])
    wqkv_b16 = (w_qkv.astype(jnp.float32) * col_scale[None, :]).astype(jnp.bfloat16)
    bqkv_f32 = b_qkv.astype(jnp.float32) * col_scale[None, :]
    wp_b16 = w_proj.astype(jnp.bfloat16)
    bp_f32 = b_proj.astype(jnp.float32)
    x2 = x.reshape(BN, E)                 # flatten (B, N) rows once, on the host

    kernel = functools.partial(mhsa_kernel, batch=B, seq=N, num_heads=H,
                               head_dim=D, embed_dim=E)

    itemsize = x.dtype.itemsize
    cost = pl.CostEstimate(
        flops=(2 * BN * E * (3 * E)            # fused QKV projection
               + 2 * G * N * N * D             # q @ k^T
               + 2 * G * N * N * D             # p @ v
               + 2 * BN * E * E),              # fused output projection
        transcendentals=G * N * N + G * N,
        bytes_accessed=(BN * E * itemsize                 # x
                        + (3 * E * E + E * E) * 2         # bf16 weights
                        + (3 * E + E) * 4                 # f32 biases
                        + BN * E * itemsize),             # output
    )

    # Single grid step: the whole problem is ~1 MFLOP, so per-step overhead
    # (~0.35us) would dominate any finer grid.  If B grows, use a "parallel"
    # batch axis with several batch elements per block so both v7x TCs get
    # pipelined work.
    # TODO(synk): at ViT scale (N~197, E=768, H=12) tile attention over query
    # blocks (flash-style) instead of materializing the full (G,N,N) scores,
    # pre-transpose K per head, and re-derive vmem_limit_bytes for v7x (64 MiB).
    out = pl.pallas_call(
        kernel,
        out_shape=jax.ShapeDtypeStruct((BN, E), x.dtype),
        grid_spec=pltpu.PrefetchScalarGridSpec(
            num_scalar_prefetch=0,
            grid=(1,),
            in_specs=[
                pl.BlockSpec((BN, E), lambda i: (0, 0)),
                pl.BlockSpec((E, 3 * E), lambda i: (0, 0)),
                pl.BlockSpec((1, 3 * E), lambda i: (0, 0)),
                pl.BlockSpec((E, E), lambda i: (0, 0)),
                pl.BlockSpec((1, E), lambda i: (0, 0)),
            ],
            out_specs=pl.BlockSpec((BN, E), lambda i: (0, 0)),
            scratch_shapes=[
                pltpu.VMEM((G, N, D), jnp.float32),   # q (head-major)
                pltpu.VMEM((G, N, D), jnp.float32),   # k (head-major)
                pltpu.VMEM((G, N, D), jnp.float32),   # v (head-major)
                pltpu.VMEM((BN, E), jnp.float32),     # merged attention context
            ],
        ),
        compiler_params=pltpu.CompilerParams(
            dimension_semantics=("arbitrary",),
            vmem_limit_bytes=32 * 1024 * 1024,
        ),
        cost_estimate=cost,
    )(x2, wqkv_b16, bqkv_f32, wp_b16, bp_f32)

    return out.reshape(B, N, E)


def reference(x, w_qkv, b_qkv, w_proj, b_proj, *, num_heads):
    """Plain-JAX f32 reference matching the PyTorch forward (dropout disabled)."""
    B, N, E = x.shape
    D = E // num_heads
    qkv = x @ w_qkv + b_qkv[0]
    q, k, v = jnp.split(qkv, 3, axis=-1)

    def to_heads(t):
        return t.reshape(B, N, num_heads, D).transpose(0, 2, 1, 3)  # (B, H, N, D)

    q, k, v = map(to_heads, (q, k, v))
    attn = jax.nn.softmax((q @ jnp.swapaxes(k, -2, -1)) * (D ** -0.5), axis=-1)
    out = (attn @ v).transpose(0, 2, 1, 3).reshape(B, N, E)
    return out @ w_proj + b_proj[0]


if __name__ == "__main__":
    # Small shapes consistent with the module; E=128 keeps all projection
    # matmuls and the output store lane-dense (full 128-lane vregs).
    B, N, E, H = 2, 8, 128, 4   # batch, seq (num_patches+1), embed_dim, num_heads

    key = jax.random.PRNGKey(0)
    kx, k1, k2, k3, k4 = jax.random.split(key, 5)

    x = jax.random.normal(kx, (B, N, E), dtype=jnp.float32)
    # PyTorch Linear weight (out, in) pre-transposed to (in, out).
    w_qkv = jax.random.normal(k1, (E, 3 * E), dtype=jnp.float32) * (E ** -0.5)
    b_qkv = jax.random.normal(k2, (1, 3 * E), dtype=jnp.float32) * 0.02
    w_proj = jax.random.normal(k3, (E, E), dtype=jnp.float32) * (E ** -0.5)
    b_proj = jax.random.normal(k4, (1, E), dtype=jnp.float32) * 0.02

    out = transformer_encoder(x, w_qkv, b_qkv, w_proj, b_proj, num_heads=H)
    out = jax.block_until_ready(out)

    ref = reference(x, w_qkv, b_qkv, w_proj, b_proj, num_heads=H)
    assert out.shape == (B, N, E)
    # bf16 MXU operands + approx reciprocal -> loosened tolerance vs f32 reference.
    assert jnp.allclose(out, ref, atol=5e-2, rtol=5e-2), "mismatch vs reference"

    print("KERNEL_OK")
</pallas_src>

<mosaic_0001>
module attributes {stable_mosaic.version = 11 : i64} {
  func.func @mhsa_kernel(%arg0: i32, %arg1: memref<16x128xf32, #tpu.memory_space<vmem>>, %arg2: memref<128x384xbf16, #tpu.memory_space<vmem>>, %arg3: memref<1x384xf32, #tpu.memory_space<vmem>>, %arg4: memref<128x128xbf16, #tpu.memory_space<vmem>>, %arg5: memref<1x128xf32, #tpu.memory_space<vmem>>, %arg6: memref<16x128xf32, #tpu.memory_space<vmem>>, %arg7: memref<8x8x32xf32, #tpu.memory_space<vmem>>, %arg8: memref<8x8x32xf32, #tpu.memory_space<vmem>>, %arg9: memref<8x8x32xf32, #tpu.memory_space<vmem>>, %arg10: memref<16x128xf32, #tpu.memory_space<vmem>>) attributes {dimension_semantics = [#tpu.dimension_semantics<arbitrary>], iteration_bounds = array<i64: 1>, scalar_prefetch = 0 : i64, scratch_operands = 4 : i64, tpu.core_type = #tpu.core_type<tc>, window_params = [{pipeline_mode = #tpu.pipeline_mode<synchronous>, transform_indices = @transform_0, window_bounds = array<i64: 16, 128>}, {pipeline_mode = #tpu.pipeline_mode<synchronous>, transform_indices = @transform_1, window_bounds = array<i64: 128, 384>}, {pipeline_mode = #tpu.pipeline_mode<synchronous>, transform_indices = @transform_2, window_bounds = array<i64: 1, 384>}, {pipeline_mode = #tpu.pipeline_mode<synchronous>, transform_indices = @transform_3, window_bounds = array<i64: 128, 128>}, {pipeline_mode = #tpu.pipeline_mode<synchronous>, transform_indices = @transform_4, window_bounds = array<i64: 1, 128>}, {pipeline_mode = #tpu.pipeline_mode<synchronous>, transform_indices = @transform_5, window_bounds = array<i64: 16, 128>}]} {
    %c0 = arith.constant 0 : index
    %c0_0 = arith.constant 0 : index
    %0 = vector.load %arg1[%c0, %c0_0] : memref<16x128xf32, #tpu.memory_space<vmem>>, vector<16x128xf32>
    %1 = arith.truncf %0 : vector<16x128xf32> to vector<16x128xbf16>
    %c0_1 = arith.constant 0 : index
    %c0_2 = arith.constant 0 : index
    %2 = vector.load %arg2[%c0_1, %c0_2] : memref<128x384xbf16, #tpu.memory_space<vmem>>, vector<128x384xbf16>
    %cst = arith.constant dense<0.000000e+00> : vector<16x384xf32>
    %3 = tpu.matmul %1, %2, %cst {dimension_numbers = #tpu.dot_dimension_numbers<[1], [0], [0], [1], [0, 0, 1, 1], [], []>} : vector<16x128xbf16>, vector<128x384xbf16>, vector<16x384xf32> -> vector<16x384xf32>
    %c0_3 = arith.constant 0 : index
    %c0_4 = arith.constant 0 : index
    %4 = vector.load %arg3[%c0_3, %c0_4] : memref<1x384xf32, #tpu.memory_space<vmem>>, vector<1x384xf32>
    %5 = vector.broadcast %4 : vector<1x384xf32> to vector<16x384xf32>
    %6 = arith.addf %3, %5 : vector<16x384xf32>
    %7 = vector.extract_strided_slice %6 {offsets = [0, 0], sizes = [8, 32], strides = [1, 1]} : vector<16x384xf32> to vector<8x32xf32>
    %c0_5 = arith.constant 0 : index
    %c0_6 = arith.constant 0 : index
    %c0_7 = arith.constant 0 : index
    %8 = vector.load %arg7[%c0_5, %c0_6, %c0_7] : memref<8x8x32xf32, #tpu.memory_space<vmem>>, vector<1x8x32xf32>
    %9 = vector.shape_cast %8 : vector<1x8x32xf32> to vector<8x32xf32>
    %10 = vector.shape_cast %7 : vector<8x32xf32> to vector<1x8x32xf32>
    tpu.vector_store %arg7[%c0_5, %c0_6, %c0_7], %10 {strides = array<i32>} : memref<8x8x32xf32, #tpu.memory_space<vmem>>, vector<1x8x32xf32>,
    %11 = vector.extract_strided_slice %6 {offsets = [0, 128], sizes = [8, 32], strides = [1, 1]} : vector<16x384xf32> to vector<8x32xf32>
    %c0_8 = arith.constant 0 : index
    %c0_9 = arith.constant 0 : index
    %c0_10 = arith.constant 0 : index
    %12 = vector.load %arg8[%c0_8, %c0_9, %c0_10] : memref<8x8x32xf32, #tpu.memory_space<vmem>>, vector<1x8x32xf32>
    %13 = vector.shape_cast %12 : vector<1x8x32xf32> to vector<8x32xf32>
    %14 = vector.shape_cast %11 : vector<8x32xf32> to vector<1x8x32xf32>
    tpu.vector_store %arg8[%c0_8, %c0_9, %c0_10], %14 {strides = array<i32>} : memref<8x8x32xf32, #tpu.memory_space<vmem>>, vector<1x8x32xf32>,
    %15 = vector.extract_strided_slice %6 {offsets = [0, 256], sizes = [8, 32], strides = [1, 1]} : vector<16x384xf32> to vector<8x32xf32>
    %c0_11 = arith.constant 0 : index
    %c0_12 = arith.constant 0 : index
    %c0_13 = arith.constant 0 : index
    %16 = vector.load %arg9[%c0_11, %c0_12, %c0_13] : memref<8x8x32xf32, #tpu.memory_space<vmem>>, vector<1x8x32xf32>
    %17 = vector.shape_cast %16 : vector<1x8x32xf32> to vector<8x32xf32>
    %18 = vector.shape_cast %15 : vector<8x32xf32> to vector<1x8x32xf32>
    tpu.vector_store %arg9[%c0_11, %c0_12, %c0_13], %18 {strides = array<i32>} : memref<8x8x32xf32, #tpu.memory_space<vmem>>, vector<1x8x32xf32>,
    %19 = vector.extract_strided_slice %6 {offsets = [0, 32], sizes = [8, 32], strides = [1, 1]} : vector<16x384xf32> to vector<8x32xf32>
    %c1 = arith.constant 1 : index
    %c0_14 = arith.constant 0 : index
    %c0_15 = arith.constant 0 : index
    %20 = vector.load %arg7[%c1, %c0_14, %c0_15] : memref<8x8x32xf32, #tpu.memory_space<vmem>>, vector<1x8x32xf32>
    %21 = vector.shape_cast %20 : vector<1x8x32xf32> to vector<8x32xf32>
    %22 = vector.shape_cast %19 : vector<8x32xf32> to vector<1x8x32xf32>
    tpu.vector_store %arg7[%c1, %c0_14, %c0_15], %22 {strides = array<i32>} : memref<8x8x32xf32, #tpu.memory_space<vmem>>, vector<1x8x32xf32>,
    %23 = vector.extract_strided_slice %6 {offsets = [0, 160], sizes = [8, 32], strides = [1, 1]} : vector<16x384xf32> to vector<8x32xf32>
    %c1_16 = arith.constant 1 : index
    %c0_17 = arith.constant 0 : index
    %c0_18 = arith.constant 0 : index
    %24 = vector.load %arg8[%c1_16, %c0_17, %c0_18] : memref<8x8x32xf32, #tpu.memory_space<vmem>>, vector<1x8x32xf32>
    %25 = vector.shape_cast %24 : vector<1x8x32xf32> to vector<8x32xf32>
    %26 = vector.shape_cast %23 : vector<8x32xf32> to vector<1x8x32xf32>
    tpu.vector_store %arg8[%c1_16, %c0_17, %c0_18], %26 {strides = array<i32>} : memref<8x8x32xf32, #tpu.memory_space<vmem>>, vector<1x8x32xf32>,
    %27 = vector.extract_strided_slice %6 {offsets = [0, 288], sizes = [8, 32], strides = [1, 1]} : vector<16x384xf32> to vector<8x32xf32>
    %c1_19 = arith.constant 1 : index
    %c0_20 = arith.constant 0 : index
    %c0_21 = arith.constant 0 : index
    %28 = vector.load %arg9[%c1_19, %c0_20, %c0_21] : memref<8x8x32xf32, #tpu.memory_space<vmem>>, vector<1x8x32xf32>
    %29 = vector.shape_cast %28 : vector<1x8x32xf32> to vector<8x32xf32>
    %30 = vector.shape_cast %27 : vector<8x32xf32> to vector<1x8x32xf32>
    tpu.vector_store %arg9[%c1_19, %c0_20, %c0_21], %30 {strides = array<i32>} : memref<8x8x32xf32, #tpu.memory_space<vmem>>, vector<1x8x32xf32>,
    %31 = vector.extract_strided_slice %6 {offsets = [0, 64], sizes = [8, 32], strides = [1, 1]} : vector<16x384xf32> to vector<8x32xf32>
    %c2 = arith.constant 2 : index
    %c0_22 = arith.constant 0 : index
    %c0_23 = arith.constant 0 : index
    %32 = vector.load %arg7[%c2, %c0_22, %c0_23] : memref<8x8x32xf32, #tpu.memory_space<vmem>>, vector<1x8x32xf32>
    %33 = vector.shape_cast %32 : vector<1x8x32xf32> to vector<8x32xf32>
    %34 = vector.shape_cast %31 : vector<8x32xf32> to vector<1x8x32xf32>
    tpu.vector_store %arg7[%c2, %c0_22, %c0_23], %34 {strides = array<i32>} : memref<8x8x32xf32, #tpu.memory_space<vmem>>, vector<1x8x32xf32>,
    %35 = vector.extract_strided_slice %6 {offsets = [0, 192], sizes = [8, 32], strides = [1, 1]} : vector<16x384xf32> to vector<8x32xf32>
    %c2_24 = arith.constant 2 : index
    %c0_25 = arith.constant 0 : index
    %c0_26 = arith.constant 0 : index
    %36 = vector.load %arg8[%c2_24, %c0_25, %c0_26] : memref<8x8x32xf32, #tpu.memory_space<vmem>>, vector<1x8x32xf32>
    %37 = vector.shape_cast %36 : vector<1x8x32xf32> to vector<8x32xf32>
    %38 = vector.shape_cast %35 : vector<8x32xf32> to vector<1x8x32xf32>
    tpu.vector_store %arg8[%c2_24, %c0_25, %c0_26], %38 {strides = array<i32>} : memref<8x8x32xf32, #tpu.memory_space<vmem>>, vector<1x8x32xf32>,
    %39 = vector.extract_strided_slice %6 {offsets = [0, 320], sizes = [8, 32], strides = [1, 1]} : vector<16x384xf32> to vector<8x32xf32>
    %c2_27 = arith.constant 2 : index
    %c0_28 = arith.constant 0 : index
    %c0_29 = arith.constant 0 : index
    %40 = vector.load %arg9[%c2_27, %c0_28, %c0_29] : memref<8x8x32xf32, #tpu.memory_space<vmem>>, vector<1x8x32xf32>
    %41 = vector.shape_cast %40 : vector<1x8x32xf32> to vector<8x32xf32>
    %42 = vector.shape_cast %39 : vector<8x32xf32> to vector<1x8x32xf32>
    tpu.vector_store %arg9[%c2_27, %c0_28, %c0_29], %42 {strides = array<i32>} : memref<8x8x32xf32, #tpu.memory_space<vmem>>, vector<1x8x32xf32>,
    %43 = vector.extract_strided_slice %6 {offsets = [0, 96], sizes = [8, 32], strides = [1, 1]} : vector<16x384xf32> to vector<8x32xf32>
    %c3 = arith.constant 3 : index
    %c0_30 = arith.constant 0 : index
    %c0_31 = arith.constant 0 : index
    %44 = vector.load %arg7[%c3, %c0_30, %c0_31] : memref<8x8x32xf32, #tpu.memory_space<vmem>>, vector<1x8x32xf32>
    %45 = vector.shape_cast %44 : vector<1x8x32xf32> to vector<8x32xf32>
    %46 = vector.shape_cast %43 : vector<8x32xf32> to vector<1x8x32xf32>
    tpu.vector_store %arg7[%c3, %c0_30, %c0_31], %46 {strides = array<i32>} : memref<8x8x32xf32, #tpu.memory_space<vmem>>, vector<1x8x32xf32>,
    %47 = vector.extract_strided_slice %6 {offsets = [0, 224], sizes = [8, 32], strides = [1, 1]} : vector<16x384xf32> to vector<8x32xf32>
    %c3_32 = arith.constant 3 : index
    %c0_33 = arith.constant 0 : index
    %c0_34 = arith.constant 0 : index
    %48 = vector.load %arg8[%c3_32, %c0_33, %c0_34] : memref<8x8x32xf32, #tpu.memory_space<vmem>>, vector<1x8x32xf32>
    %49 = vector.shape_cast %48 : vector<1x8x32xf32> to vector<8x32xf32>
    %50 = vector.shape_cast %47 : vector<8x32xf32> to vector<1x8x32xf32>
    tpu.vector_store %arg8[%c3_32, %c0_33, %c0_34], %50 {strides = array<i32>} : memref<8x8x32xf32, #tpu.memory_space<vmem>>, vector<1x8x32xf32>,
    %51 = vector.extract_strided_slice %6 {offsets = [0, 352], sizes = [8, 32], strides = [1, 1]} : vector<16x384xf32> to vector<8x32xf32>
    %c3_35 = arith.constant 3 : index
    %c0_36 = arith.constant 0 : index
    %c0_37 = arith.constant 0 : index
    %52 = vector.load %arg9[%c3_35, %c0_36, %c0_37] : memref<8x8x32xf32, #tpu.memory_space<vmem>>, vector<1x8x32xf32>
    %53 = vector.shape_cast %52 : vector<1x8x32xf32> to vector<8x32xf32>
    %54 = vector.shape_cast %51 : vector<8x32xf32> to vector<1x8x32xf32>
    tpu.vector_store %arg9[%c3_35, %c0_36, %c0_37], %54 {strides = array<i32>} : memref<8x8x32xf32, #tpu.memory_space<vmem>>, vector<1x8x32xf32>,
    %55 = vector.extract_strided_slice %6 {offsets = [8, 0], sizes = [8, 32], strides = [1, 1]} : vector<16x384xf32> to vector<8x32xf32>
    %c4 = arith.constant 4 : index
    %c0_38 = arith.constant 0 : index
    %c0_39 = arith.constant 0 : index
    %56 = vector.load %arg7[%c4, %c0_38, %c0_39] : memref<8x8x32xf32, #tpu.memory_space<vmem>>, vector<1x8x32xf32>
    %57 = vector.shape_cast %56 : vector<1x8x32xf32> to vector<8x32xf32>
    %58 = vector.shape_cast %55 : vector<8x32xf32> to vector<1x8x32xf32>
    tpu.vector_store %arg7[%c4, %c0_38, %c0_39], %58 {strides = array<i32>} : memref<8x8x32xf32, #tpu.memory_space<vmem>>, vector<1x8x32xf32>,
    %59 = vector.extract_strided_slice %6 {offsets = [8, 128], sizes = [8, 32], strides = [1, 1]} : vector<16x384xf32> to vector<8x32xf32>
    %c4_40 = arith.constant 4 : index
    %c0_41 = arith.constant 0 : index
    %c0_42 = arith.constant 0 : index
    %60 = vector.load %arg8[%c4_40, %c0_41, %c0_42] : memref<8x8x32xf32, #tpu.memory_space<vmem>>, vector<1x8x32xf32>
    %61 = vector.shape_cast %60 : vector<1x8x32xf32> to vector<8x32xf32>
    %62 = vector.shape_cast %59 : vector<8x32xf32> to vector<1x8x32xf32>
    tpu.vector_store %arg8[%c4_40, %c0_41, %c0_42], %62 {strides = array<i32>} : memref<8x8x32xf32, #tpu.memory_space<vmem>>, vector<1x8x32xf32>,
    %63 = vector.extract_strided_slice %6 {offsets = [8, 256], sizes = [8, 32], strides = [1, 1]} : vector<16x384xf32> to vector<8x32xf32>
    %c4_43 = arith.constant 4 : index
    %c0_44 = arith.constant 0 : index
    %c0_45 = arith.constant 0 : index
    %64 = vector.load %arg9[%c4_43, %c0_44, %c0_45] : memref<8x8x32xf32, #tpu.memory_space<vmem>>, vector<1x8x32xf32>
    %65 = vector.shape_cast %64 : vector<1x8x32xf32> to vector<8x32xf32>
    %66 = vector.shape_cast %63 : vector<8x32xf32> to vector<1x8x32xf32>
    tpu.vector_store %arg9[%c4_43, %c0_44, %c0_45], %66 {strides = array<i32>} : memref<8x8x32xf32, #tpu.memory_space<vmem>>, vector<1x8x32xf32>,
    %67 = vector.extract_strided_slice %6 {offsets = [8, 32], sizes = [8, 32], strides = [1, 1]} : vector<16x384xf32> to vector<8x32xf32>
    %c5 = arith.constant 5 : index
    %c0_46 = arith.constant 0 : index
    %c0_47 = arith.constant 0 : index
    %68 = vector.load %arg7[%c5, %c0_46, %c0_47] : memref<8x8x32xf32, #tpu.memory_space<vmem>>, vector<1x8x32xf32>
    %69 = vector.shape_cast %68 : vector<1x8x32xf32> to vector<8x32xf32>
    %70 = vector.shape_cast %67 : vector<8x32xf32> to vector<1x8x32xf32>
    tpu.vector_store %arg7[%c5, %c0_46, %c0_47], %70 {strides = array<i32>} : memref<8x8x32xf32, #tpu.memory_space<vmem>>, vector<1x8x32xf32>,
    %71 = vector.extract_strided_slice %6 {offsets = [8, 160], sizes = [8, 32], strides = [1, 1]} : vector<16x384xf32> to vector<8x32xf32>
    %c5_48 = arith.constant 5 : index
    %c0_49 = arith.constant 0 : index
    %c0_50 = arith.constant 0 : index
    %72 = vector.load %arg8[%c5_48, %c0_49, %c0_50] : memref<8x8x32xf32, #tpu.memory_space<vmem>>, vector<1x8x32xf32>
    %73 = vector.shape_cast %72 : vector<1x8x32xf32> to vector<8x32xf32>
    %74 = vector.shape_cast %71 : vector<8x32xf32> to vector<1x8x32xf32>
    tpu.vector_store %arg8[%c5_48, %c0_49, %c0_50], %74 {strides = array<i32>} : memref<8x8x32xf32, #tpu.memory_space<vmem>>, vector<1x8x32xf32>,
    %75 = vector.extract_strided_slice %6 {offsets = [8, 288], sizes = [8, 32], strides = [1, 1]} : vector<16x384xf32> to vector<8x32xf32>
    %c5_51 = arith.constant 5 : index
    %c0_52 = arith.constant 0 : index
    %c0_53 = arith.constant 0 : index
    %76 = vector.load %arg9[%c5_51, %c0_52, %c0_53] : memref<8x8x32xf32, #tpu.memory_space<vmem>>, vector<1x8x32xf32>
    %77 = vector.shape_cast %76 : vector<1x8x32xf32> to vector<8x32xf32>
    %78 = vector.shape_cast %75 : vector<8x32xf32> to vector<1x8x32xf32>
    tpu.vector_store %arg9[%c5_51, %c0_52, %c0_53], %78 {strides = array<i32>} : memref<8x8x32xf32, #tpu.memory_space<vmem>>, vector<1x8x32xf32>,
    %79 = vector.extract_strided_slice %6 {offsets = [8, 64], sizes = [8, 32], strides = [1, 1]} : vector<16x384xf32> to vector<8x32xf32>
    %c6 = arith.constant 6 : index
    %c0_54 = arith.constant 0 : index
    %c0_55 = arith.constant 0 : index
    %80 = vector.load %arg7[%c6, %c0_54, %c0_55] : memref<8x8x32xf32, #tpu.memory_space<vmem>>, vector<1x8x32xf32>
    %81 = vector.shape_cast %80 : vector<1x8x32xf32> to vector<8x32xf32>
    %82 = vector.shape_cast %79 : vector<8x32xf32> to vector<1x8x32xf32>
    tpu.vector_store %arg7[%c6, %c0_54, %c0_55], %82 {strides = array<i32>} : memref<8x8x32xf32, #tpu.memory_space<vmem>>, vector<1x8x32xf32>,
    %83 = vector.extract_strided_slice %6 {offsets = [8, 192], sizes = [8, 32], strides = [1, 1]} : vector<16x384xf32> to vector<8x32xf32>
    %c6_56 = arith.constant 6 : index
    %c0_57 = arith.constant 0 : index
    %c0_58 = arith.constant 0 : index
    %84 = vector.load %arg8[%c6_56, %c0_57, %c0_58] : memref<8x8x32xf32, #tpu.memory_space<vmem>>, vector<1x8x32xf32>
    %85 = vector.shape_cast %84 : vector<1x8x32xf32> to vector<8x32xf32>
    %86 = vector.shape_cast %83 : vector<8x32xf32> to vector<1x8x32xf32>
    tpu.vector_store %arg8[%c6_56, %c0_57, %c0_58], %86 {strides = array<i32>} : memref<8x8x32xf32, #tpu.memory_space<vmem>>, vector<1x8x32xf32>,
    %87 = vector.extract_strided_slice %6 {offsets = [8, 320], sizes = [8, 32], strides = [1, 1]} : vector<16x384xf32> to vector<8x32xf32>
    %c6_59 = arith.constant 6 : index
    %c0_60 = arith.constant 0 : index
    %c0_61 = arith.constant 0 : index
    %88 = vector.load %arg9[%c6_59, %c0_60, %c0_61] : memref<8x8x32xf32, #tpu.memory_space<vmem>>, vector<1x8x32xf32>
    %89 = vector.shape_cast %88 : vector<1x8x32xf32> to vector<8x32xf32>
    %90 = vector.shape_cast %87 : vector<8x32xf32> to vector<1x8x32xf32>
    tpu.vector_store %arg9[%c6_59, %c0_60, %c0_61], %90 {strides = array<i32>} : memref<8x8x32xf32, #tpu.memory_space<vmem>>, vector<1x8x32xf32>,
    %91 = vector.extract_strided_slice %6 {offsets = [8, 96], sizes = [8, 32], strides = [1, 1]} : vector<16x384xf32> to vector<8x32xf32>
    %c7 = arith.constant 7 : index
    %c0_62 = arith.constant 0 : index
    %c0_63 = arith.constant 0 : index
    %92 = vector.load %arg7[%c7, %c0_62, %c0_63] : memref<8x8x32xf32, #tpu.memory_space<vmem>>, vector<1x8x32xf32>
    %93 = vector.shape_cast %92 : vector<1x8x32xf32> to vector<8x32xf32>
    %94 = vector.shape_cast %91 : vector<8x32xf32> to vector<1x8x32xf32>
    tpu.vector_store %arg7[%c7, %c0_62, %c0_63], %94 {strides = array<i32>} : memref<8x8x32xf32, #tpu.memory_space<vmem>>, vector<1x8x32xf32>,
    %95 = vector.extract_strided_slice %6 {offsets = [8, 224], sizes = [8, 32], strides = [1, 1]} : vector<16x384xf32> to vector<8x32xf32>
    %c7_64 = arith.constant 7 : index
    %c0_65 = arith.constant 0 : index
    %c0_66 = arith.constant 0 : index
    %96 = vector.load %arg8[%c7_64, %c0_65, %c0_66] : memref<8x8x32xf32, #tpu.memory_space<vmem>>, vector<1x8x32xf32>
    %97 = vector.shape_cast %96 : vector<1x8x32xf32> to vector<8x32xf32>
    %98 = vector.shape_cast %95 : vector<8x32xf32> to vector<1x8x32xf32>
    tpu.vector_store %arg8[%c7_64, %c0_65, %c0_66], %98 {strides = array<i32>} : memref<8x8x32xf32, #tpu.memory_space<vmem>>, vector<1x8x32xf32>,
    %99 = vector.extract_strided_slice %6 {offsets = [8, 352], sizes = [8, 32], strides = [1, 1]} : vector<16x384xf32> to vector<8x32xf32>
    %c7_67 = arith.constant 7 : index
    %c0_68 = arith.constant 0 : index
    %c0_69 = arith.constant 0 : index
    %100 = vector.load %arg9[%c7_67, %c0_68, %c0_69] : memref<8x8x32xf32, #tpu.memory_space<vmem>>, vector<1x8x32xf32>
    %101 = vector.shape_cast %100 : vector<1x8x32xf32> to vector<8x32xf32>
    %102 = vector.shape_cast %99 : vector<8x32xf32> to vector<1x8x32xf32>
    tpu.vector_store %arg9[%c7_67, %c0_68, %c0_69], %102 {strides = array<i32>} : memref<8x8x32xf32, #tpu.memory_space<vmem>>, vector<1x8x32xf32>,
    %c0_70 = arith.constant 0 : index
    %c0_71 = arith.constant 0 : index
    %c0_72 = arith.constant 0 : index
    %103 = vector.load %arg7[%c0_70, %c0_71, %c0_72] : memref<8x8x32xf32, #tpu.memory_space<vmem>>, vector<8x8x32xf32>
    %104 = arith.truncf %103 : vector<8x8x32xf32> to vector<8x8x32xbf16>
    %c0_73 = arith.constant 0 : index
    %c0_74 = arith.constant 0 : index
    %c0_75 = arith.constant 0 : index
    %105 = vector.load %arg8[%c0_73, %c0_74, %c0_75] : memref<8x8x32xf32, #tpu.memory_space<vmem>>, vector<8x8x32xf32>
    %106 = arith.truncf %105 : vector<8x8x32xf32> to vector<8x8x32xbf16>
    %c0_76 = arith.constant 0 : index
    %c0_77 = arith.constant 0 : index
    %c0_78 = arith.constant 0 : index
    %107 = vector.load %arg9[%c0_76, %c0_77, %c0_78] : memref<8x8x32xf32, #tpu.memory_space<vmem>>, vector<8x8x32xf32>
    %108 = arith.truncf %107 : vector<8x8x32xf32> to vector<8x8x32xbf16>
    "tpu.trace_start"() <{level = 10 : i32, message = "gnd,gmd->gnm"}> : () -> ()
    %cst_79 = arith.constant dense<0.000000e+00> : vector<8x8x8xf32>
    %109 = tpu.matmul %104, %106, %cst_79 {dimension_numbers = #tpu.dot_dimension_numbers<[2], [2], [1], [1], [0, 0, 0, 1, 1, 1], [0], [0]>} : vector<8x8x32xbf16>, vector<8x8x32xbf16>, vector<8x8x8xf32> -> vector<8x8x8xf32>
    "tpu.trace_stop"() : () -> ()
    %cst_80 = arith.constant dense<0xFF800000> : vector<8x8xf32>
    %110 = vector.multi_reduction <maximumf>, %109, %cst_80 [2] : vector<8x8x8xf32> to vector<8x8xf32>
    %111 = vector.shape_cast %110 : vector<8x8xf32> to vector<8x8x1xf32>
    %112 = vector.broadcast %111 : vector<8x8x1xf32> to vector<8x8x8xf32>
    %113 = arith.subf %109, %112 : vector<8x8x8xf32>
    %114 = math.exp %113 : vector<8x8x8xf32>
    %cst_81 = arith.constant dense<0.000000e+00> : vector<8x8xf32>
    %115 = vector.multi_reduction <add>, %114, %cst_81 [2] : vector<8x8x8xf32> to vector<8x8xf32>
    %116 = vector.shape_cast %115 : vector<8x8xf32> to vector<8x8x1xf32>
    %117 = arith.truncf %114 : vector<8x8x8xf32> to vector<8x8x8xbf16>
    "tpu.trace_start"() <{level = 10 : i32, message = "gnm,gmd->gnd"}> : () -> ()
    %cst_82 = arith.constant dense<0.000000e+00> : vector<8x8x32xf32>
    %118 = tpu.matmul %117, %108, %cst_82 {dimension_numbers = #tpu.dot_dimension_numbers<[2], [1], [1], [2], [0, 0, 0, 1, 1, 2], [0], [0]>} : vector<8x8x8xbf16>, vector<8x8x32xbf16>, vector<8x8x32xf32> -> vector<8x8x32xf32>
    "tpu.trace_stop"() : () -> ()
    %119 = tpu.reciprocal %116 {approx = true} : vector<8x8x1xf32> -> vector<8x8x1xf32>
    %120 = vector.broadcast %119 : vector<8x8x1xf32> to vector<8x8x32xf32>
    %121 = arith.mulf %118, %120 : vector<8x8x32xf32>
    %122 = vector.extract_strided_slice %121 {offsets = [0, 0, 0], sizes = [1, 8, 32], strides = [1, 1, 1]} : vector<8x8x32xf32> to vector<1x8x32xf32>
    %123 = vector.shape_cast %122 : vector<1x8x32xf32> to vector<8x32xf32>
    %c0_83 = arith.constant 0 : index
    %c0_84 = arith.constant 0 : index
    %124 = vector.load %arg10[%c0_83, %c0_84] : memref<16x128xf32, #tpu.memory_space<vmem>>, vector<8x32xf32>
    tpu.vector_store %arg10[%c0_83, %c0_84], %123 {strides = array<i32>} : memref<16x128xf32, #tpu.memory_space<vmem>>, vector<8x32xf32>,
    %125 = vector.extract_strided_slice %121 {offsets = [1, 0, 0], sizes = [1, 8, 32], strides = [1, 1, 1]} : vector<8x8x32xf32> to vector<1x8x32xf32>
    %126 = vector.shape_cast %125 : vector<1x8x32xf32> to vector<8x32xf32>
    %c0_85 = arith.constant 0 : index
    %c32 = arith.constant 32 : index
    %127 = vector.load %arg10[%c0_85, %c32] : memref<16x128xf32, #tpu.memory_space<vmem>>, vector<8x32xf32>
    tpu.vector_store %arg10[%c0_85, %c32], %126 {strides = array<i32>} : memref<16x128xf32, #tpu.memory_space<vmem>>, vector<8x32xf32>,
    %128 = vector.extract_strided_slice %121 {offsets = [2, 0, 0], sizes = [1, 8, 32], strides = [1, 1, 1]} : vector<8x8x32xf32> to vector<1x8x32xf32>
    %129 = vector.shape_cast %128 : vector<1x8x32xf32> to vector<8x32xf32>
    %c0_86 = arith.constant 0 : index
    %c64 = arith.constant 64 : index
    %130 = vector.load %arg10[%c0_86, %c64] : memref<16x128xf32, #tpu.memory_space<vmem>>, vector<8x32xf32>
    tpu.vector_store %arg10[%c0_86, %c64], %129 {strides = array<i32>} : memref<16x128xf32, #tpu.memory_space<vmem>>, vector<8x32xf32>,
    %131 = vector.extract_strided_slice %121 {offsets = [3, 0, 0], sizes = [1, 8, 32], strides = [1, 1, 1]} : vector<8x8x32xf32> to vector<1x8x32xf32>
    %132 = vector.shape_cast %131 : vector<1x8x32xf32> to vector<8x32xf32>
    %c0_87 = arith.constant 0 : index
    %c96 = arith.constant 96 : index
    %133 = vector.load %arg10[%c0_87, %c96] : memref<16x128xf32, #tpu.memory_space<vmem>>, vector<8x32xf32>
    tpu.vector_store %arg10[%c0_87, %c96], %132 {strides = array<i32>} : memref<16x128xf32, #tpu.memory_space<vmem>>, vector<8x32xf32>,
    %134 = vector.extract_strided_slice %121 {offsets = [4, 0, 0], sizes = [1, 8, 32], strides = [1, 1, 1]} : vector<8x8x32xf32> to vector<1x8x32xf32>
    %135 = vector.shape_cast %134 : vector<1x8x32xf32> to vector<8x32xf32>
    %c8 = arith.constant 8 : index
    %c0_88 = arith.constant 0 : index
    %136 = vector.load %arg10[%c8, %c0_88] : memref<16x128xf32, #tpu.memory_space<vmem>>, vector<8x32xf32>
    tpu.vector_store %arg10[%c8, %c0_88], %135 {strides = array<i32>} : memref<16x128xf32, #tpu.memory_space<vmem>>, vector<8x32xf32>,
    %137 = vector.extract_strided_slice %121 {offsets = [5, 0, 0], sizes = [1, 8, 32], strides = [1, 1, 1]} : vector<8x8x32xf32> to vector<1x8x32xf32>
    %138 = vector.shape_cast %137 : vector<1x8x32xf32> to vector<8x32xf32>
    %c8_89 = arith.constant 8 : index
    %c32_90 = arith.constant 32 : index
    %139 = vector.load %arg10[%c8_89, %c32_90] : memref<16x128xf32, #tpu.memory_space<vmem>>, vector<8x32xf32>
    tpu.vector_store %arg10[%c8_89, %c32_90], %138 {strides = array<i32>} : memref<16x128xf32, #tpu.memory_space<vmem>>, vector<8x32xf32>,
    %140 = vector.extract_strided_slice %121 {offsets = [6, 0, 0], sizes = [1, 8, 32], strides = [1, 1, 1]} : vector<8x8x32xf32> to vector<1x8x32xf32>
    %141 = vector.shape_cast %140 : vector<1x8x32xf32> to vector<8x32xf32>
    %c8_91 = arith.constant 8 : index
    %c64_92 = arith.constant 64 : index
    %142 = vector.load %arg10[%c8_91, %c64_92] : memref<16x128xf32, #tpu.memory_space<vmem>>, vector<8x32xf32>
    tpu.vector_store %arg10[%c8_91, %c64_92], %141 {strides = array<i32>} : memref<16x128xf32, #tpu.memory_space<vmem>>, vector<8x32xf32>,
    %143 = vector.extract_strided_slice %121 {offsets = [7, 0, 0], sizes = [1, 8, 32], strides = [1, 1, 1]} : vector<8x8x32xf32> to vector<1x8x32xf32>
    %144 = vector.shape_cast %143 : vector<1x8x32xf32> to vector<8x32xf32>
    %c8_93 = arith.constant 8 : index
    %c96_94 = arith.constant 96 : index
    %145 = vector.load %arg10[%c8_93, %c96_94] : memref<16x128xf32, #tpu.memory_space<vmem>>, vector<8x32xf32>
    tpu.vector_store %arg10[%c8_93, %c96_94], %144 {strides = array<i32>} : memref<16x128xf32, #tpu.memory_space<vmem>>, vector<8x32xf32>,
    %c0_95 = arith.constant 0 : index
    %c0_96 = arith.constant 0 : index
    %146 = vector.load %arg10[%c0_95, %c0_96] : memref<16x128xf32, #tpu.memory_space<vmem>>, vector<16x128xf32>
    %147 = arith.truncf %146 : vector<16x128xf32> to vector<16x128xbf16>
    %c0_97 = arith.constant 0 : index
    %c0_98 = arith.constant 0 : index
    %148 = vector.load %arg4[%c0_97, %c0_98] : memref<128x128xbf16, #tpu.memory_space<vmem>>, vector<128x128xbf16>
    %cst_99 = arith.constant dense<0.000000e+00> : vector<16x128xf32>
    %149 = tpu.matmul %147, %148, %cst_99 {dimension_numbers = #tpu.dot_dimension_numbers<[1], [0], [0], [1], [0, 0, 1, 1], [], []>} : vector<16x128xbf16>, vector<128x128xbf16>, vector<16x128xf32> -> vector<16x128xf32>
    %c0_100 = arith.constant 0 : index
    %c0_101 = arith.constant 0 : index
    %150 = vector.load %arg5[%c0_100, %c0_101] : memref<1x128xf32, #tpu.memory_space<vmem>>, vector<1x128xf32>
    %151 = vector.broadcast %150 : vector<1x128xf32> to vector<16x128xf32>
    %152 = arith.addf %149, %151 : vector<16x128xf32>
    %c0_102 = arith.constant 0 : index
    %c0_103 = arith.constant 0 : index
    %153 = vector.load %arg6[%c0_102, %c0_103] : memref<16x128xf32, #tpu.memory_space<vmem>>, vector<16x128xf32>
    tpu.vector_store %arg6[%c0_102, %c0_103], %152 {strides = array<i32>} : memref<16x128xf32, #tpu.memory_space<vmem>>, vector<16x128xf32>,
    return
  }
  func.func @transform_0(%arg0: i32) -> (i32, i32) {
    %c0_i32 = arith.constant 0 : i32
    %c0_i32_0 = arith.constant 0 : i32
    %c0_i32_1 = arith.constant 0 : i32
    return %c0_i32, %c0_i32_0 : i32, i32
  }
  func.func @transform_1(%arg0: i32) -> (i32, i32) {
    %c0_i32 = arith.constant 0 : i32
    %c0_i32_0 = arith.constant 0 : i32
    %c0_i32_1 = arith.constant 0 : i32
    return %c0_i32, %c0_i32_0 : i32, i32
  }
  func.func @transform_2(%arg0: i32) -> (i32, i32) {
    %c0_i32 = arith.constant 0 : i32
    %c0_i32_0 = arith.constant 0 : i32
    %c0_i32_1 = arith.constant 0 : i32
    return %c0_i32, %c0_i32_0 : i32, i32
  }
  func.func @transform_3(%arg0: i32) -> (i32, i32) {
    %c0_i32 = arith.constant 0 : i32
    %c0_i32_0 = arith.constant 0 : i32
    %c0_i32_1 = arith.constant 0 : i32
    return %c0_i32, %c0_i32_0 : i32, i32
  }
  func.func @transform_4(%arg0: i32) -> (i32, i32) {
    %c0_i32 = arith.constant 0 : i32
    %c0_i32_0 = arith.constant 0 : i32
    %c0_i32_1 = arith.constant 0 : i32
    return %c0_i32, %c0_i32_0 : i32, i32
  }
  func.func @transform_5(%arg0: i32) -> (i32, i32) {
    %c0_i32 = arith.constant 0 : i32
    %c0_i32_0 = arith.constant 0 : i32
    %c0_i32_1 = arith.constant 0 : i32
    return %c0_i32, %c0_i32_0 : i32, i32
  }
}

</mosaic_0001>

<bundles_post_ra>
// kernel: tpu_custom_call.1
= control target key start
LH: loop header
LB: loop body
LE: loop exit
PB: predicated region body
PF: predicated region fallthrough
CT: control target
= control target key end

     0   :  { %10 = vsyncpa [#allocation7], 0  ;;  %s1550_s0 = inlined_call_operand.hbm [shape: f32[16,128], index: 0, kind: input, shape index: {}]   ;;  %s1551_s1 = inlined_call_operand.hbm [shape: bf16[128,384], index: 1, kind: input, shape index: {}]   ;;  %s1552_s2 = inlined_call_operand.hbm [shape: f32[1,384], index: 2, kind: input, shape index: {}]   ;;  %s1553_s3 = inlined_call_operand.hbm [shape: bf16[128,128], index: 3, kind: input, shape index: {}]   ;;  %s1554_s4 = inlined_call_operand.vmem [shape: f32[1,128], index: 4, kind: input, shape index: {}]   ;;  %s1555_s5 = inlined_call_operand.hbm [shape: f32[16,128], index: 5, kind: output, shape index: {}]  }
   0x1   :  { %11 = vsyncpa [#allocation10], 0 }
   0x2   :  { %12 = vsyncpa [#allocation13], 0  ;;  %s31_s20 = sshll.u32 %s1551_s1, 4  ;;  %s32_s20 = int_to_ptr.hbm [resolvable:$true] %s31_s20 }
   0x3   :  { %13 = vsyncpa [#allocation8], 0  ;;  %s1345_s21 = smov [#allocation9]   ;;  %s18_s25 = sshll.u32 %s1550_s0, 4  ;;  %s19_s25 = int_to_ptr.hbm [resolvable:$true] %s18_s25 }
   0x4   :  { %s33_s22 = sshll.u32 %s1345_s21, 4  ;;  %s1346_s26 = smov 192   ;;  %s34_s22 = int_to_ptr.vmem [resolvable:$true] %s33_s22 }
   0x5   :  { %s1347_s27 = smov 12   ;;  %s1348_s28 = smov [#allocation6]  }
   0x6   :  { %39 = dma.hbm_to_vmem [thread:$0]  %s32_s20, 3072, %s34_s22, [#allocation10], %s1346_s26, %s1346_s26, %s1347_s27  }
   0x7   :  { %s20_s29 = sshll.u32 %s1348_s28, 4  ;;  %s1349_s30 = smov 128   ;;  %s21_s29 = int_to_ptr.vmem [resolvable:$true] %s20_s29 }
   0x8   :  { %s1350_s6 = smov 8   ;;  %s45_s8 = sshll.u32 %s1552_s2, 4  ;;  %s46_s8 = int_to_ptr.hbm [resolvable:$true] %s45_s8 }
   0x9   :  { %26 = dma.hbm_to_vmem [thread:$0]  %s19_s25, 256, %s21_s29, [#allocation7], %s1349_s30, %s1349_s30, %s1350_s6  }
   0xa   :  { %s1351_s9 = smov [#allocation11]   ;;  %s55_s12 = sshll.u32 %s1553_s3, 4  ;;  %s56_s12 = int_to_ptr.hbm [resolvable:$true] %s55_s12 }
   0xb   :  { %s47_s0 = sshll.u32 %s1351_s9, 4  ;;  %s1352_s13 = smov [#allocation12]   ;;  %s48_s0 = int_to_ptr.vmem [resolvable:$true] %s47_s0 }
   0xc   :  { %50 = dma.hbm_to_vmem [thread:$0]  %s46_s8, 48, %s48_s0, [#allocation10]  }
   0xd   :  { %s57_s14 = sshll.u32 %s1352_s13, 4  ;;  %s1353_s15 = smov 64   ;;  %s58_s14 = int_to_ptr.vmem [resolvable:$true] %s57_s14 }
   0xe   :  { %s1354_s16 = smov 4  }
   0xf   :  { %63 = dma.hbm_to_vmem [thread:$0]  %s56_s12, 1024, %s58_s14, [#allocation13], %s1353_s15, %s1353_s15, %s1354_s16  }
  0x10   :  { %1337 = dma.done.wait [#allocation7], 256  }
  0x11   :  { %1338 = vsyncadd [#allocation7], 4294967040 }
  0x12   :  { %1339 = dma.done.wait [#allocation10], 3120  }
  0x13   :  { %1340 = vsyncadd [#allocation10], 4294964176 }
  0x14   :  { %1341 = dma.done.wait [#allocation13], 1024  }
  0x15   :  { %1342 = vsyncadd [#allocation13], 4294966272  ;;  %v1160_v0 = vld [vmem:[#allocation9 + $0xac] sm:$0xf]  ;;  %v1083_v1 = vld [vmem:[#allocation9 + $0xb4] sm:$0xf0] }
  0x16   :  { %v1157_v2 = vld [vmem:[#allocation9 + $0x94] sm:$0xf]  ;;  %v1086_v3 = vor.u32 %v1160_v0, %v1083_v1  ;;  %v1071_v4 = vld [vmem:[#allocation9 + $0x9c] sm:$0xf0]  ;;  %v1081_v5 = vld [vmem:[#allocation9 + $0xa8] sm:$0xf] }
  0x17   :  { %v1161_v6 = vld [vmem:[#allocation9 + $0xb0] sm:$0xf0]  ;;  %v1069_v8 = vld [vmem:[#allocation9 + $0x90] sm:$0xf]  ;;  %v1074_v9 = vor.u32 %v1157_v2, %v1071_v4  ;;  %v1158_v10 = vld [vmem:[#allocation9 + $0x98] sm:$0xf0] }
  0x18   :  { %v1082_v7 = vor.u32 %v1161_v6, %v1081_v5  ;;  %268 = vmatpush.bf16.msra.mxu1 %v1086_v3  ;;  %v1154_v11 = vld [vmem:[#allocation9 + $0x7c] sm:$0xf]  ;;  %v1059_v12 = vld [vmem:[#allocation9 + $0x84] sm:$0xf0]  ;;  %v1070_v13 = vor.u32 %v1158_v10, %v1069_v8  ;;  %v1057_v14 = vld [vmem:[#allocation9 + $0x78] sm:$0xf] }
  0x19   :  { %v1155_v15 = vld [vmem:[#allocation9 + $0x80] sm:$0xf0]  ;;  %v1062_v16 = vor.u32 %v1154_v11, %v1059_v12  ;;  %v1047_v18 = vld [vmem:[#allocation9 + $0x6c] sm:$0xf0]  ;;  %v1045_v20 = vld [vmem:[#allocation9 + $0x60] sm:$0xf] }
  0x1a   :  { %254 = vmatpush.bf16.msra.mxu0 %v1082_v7  ;;  %v1151_v17 = vld [vmem:[#allocation9 + $0x64] sm:$0xf]  ;;  %v1058_v19 = vor.u32 %v1155_v15, %v1057_v14  ;;  %v1152_v21 = vld [vmem:[#allocation9 + $0x68] sm:$0xf0]  ;;  %v1089_v24 = vld [vmem:[#allocation9 + $0xb0] sm:$0xf] }
  0x1b   :  { %v1050_v22 = vor.u32 %v1151_v17, %v1047_v18  ;;  %v1148_v23 = vld [vmem:[#allocation9 + $0x4c] sm:$0xf]  ;;  %v1162_v25 = vld [vmem:[#allocation9 + $0xb8] sm:$0xf0]  ;;  %v1035_v26 = vld [vmem:[#allocation9 + $0x54] sm:$0xf0]  ;;  %v1046_v27 = vor.u32 %v1152_v21, %v1045_v20 }
  0x1c   :  { %269 = vmatpush.bf16.msra.mxu1 %v1074_v9  ;;  %v1090_v28 = vor.u32 %v1162_v25, %v1089_v24  ;;  %v1077_v29 = vld [vmem:[#allocation9 + $0x98] sm:$0xf]  ;;  %v1159_v30 = vld [vmem:[#allocation9 + $0xa0] sm:$0xf0]  ;;  %v1033_v31 = vld [vmem:[#allocation9 + $0x48] sm:$0xf]  ;;  %v1038_v34 = vor.u32 %v1148_v23, %v1035_v26 }
  0x1d   :  { %v1149_v32 = vld [vmem:[#allocation9 + $0x50] sm:$0xf0]  ;;  %v1078_v33 = vor.u32 %v1159_v30, %v1077_v29  ;;  %v1065_v35 = vld [vmem:[#allocation9 + $0x80] sm:$0xf]  ;;  %v1156_v36 = vld [vmem:[#allocation9 + $0x88] sm:$0xf0] }
  0x1e   :  { %255 = vmatpush.bf16.msra.mxu0 %v1070_v13  ;;  %282 = vmatpush.bf16.msra.mxu2 %v1090_v28  ;;  %v1145_v37 = vld [vmem:[#allocation9 + $0x34] sm:$0xf]  ;;  %v1023_v38 = vld [vmem:[#allocation9 + $0x3c] sm:$0xf0]  ;;  %v1034_v39 = vor.u32 %v1149_v32, %v1033_v31  ;;  %v1021_v40 = vld [vmem:[#allocation9 + $0x30] sm:$0xf]  ;;  %v1066_v42 = vor.u32 %v1156_v36, %v1065_v35 }
  0x1f   :  { %v1146_v41 = vld [vmem:[#allocation9 + $0x38] sm:$0xf0]  ;;  %v1026_v43 = vor.u32 %v1145_v37, %v1023_v38  ;;  %v1053_v44 = vld [vmem:[#allocation9 + $0x68] sm:$0xf]  ;;  %v1153_v45 = vld [vmem:[#allocation9 + $0x70] sm:$0xf0] }
  0x20   :  { %270 = vmatpush.bf16.msra.mxu1 %v1062_v16  ;;  %v1142_v46 = vld [vmem:[#allocation9 + $0x1c] sm:$0xf]  ;;  %v1011_v47 = vld [vmem:[#allocation9 + $0x24] sm:$0xf0]  ;;  %v1022_v48 = vor.u32 %v1146_v41, %v1021_v40  ;;  %v1009_v49 = vld [vmem:[#allocation9 + $0x18] sm:$0xf]  ;;  %v1054_v51 = vor.u32 %v1153_v45, %v1053_v44 }
  0x21   :  { %v1143_v50 = vld [vmem:[#allocation9 + $0x20] sm:$0xf0]  ;;  %v1014_v52 = vor.u32 %v1142_v46, %v1011_v47  ;;  %v1041_v53 = vld [vmem:[#allocation9 + $0x50] sm:$0xf]  ;;  %v1150_v54 = vld [vmem:[#allocation9 + $0x58] sm:$0xf0] }
  0x22   :  { %256 = vmatpush.bf16.msra.mxu0 %v1058_v19  ;;  %283 = vmatpush.bf16.msra.mxu2 %v1078_v33  ;;  %v1139_v55 = vld [vmem:[#allocation9 + $0x4] sm:$0xf]  ;;  %v999_v56 = vld [vmem:[#allocation9 + $0xc] sm:$0xf0]  ;;  %v1010_v57 = vor.u32 %v1143_v50, %v1009_v49  ;;  %v997_v58 = vld [vmem:[#allocation9] sm:$0xf]  ;;  %v1042_v60 = vor.u32 %v1150_v54, %v1041_v53 }
  0x23   :  { %v1140_v59 = vld [vmem:[#allocation9 + $0x8] sm:$0xf0]  ;;  %v1002_v61 = vor.u32 %v1139_v55, %v999_v56  ;;  %v83_v62 = vld [vmem:[#allocation6] sm:$0xff]  ;;  %v84_v63 = vld [vmem:[#allocation6 + $0x8] sm:$0xff]  ;;  %vm296_vm0 = vcmask 261120   ;;  %s1355_s2 = smov 32  }
  0x24   :  { %271 = vmatpush.bf16.msra.mxu1 %v1050_v22  ;;  %v998_v0 = vor.u32 %v1140_v59, %v997_v58  ;;  %v85_v1 = vpack.c.bf16 %v84_v63, %v83_v62  ;;  %v1029_v2 = vld [vmem:[#allocation9 + $0x38] sm:$0xf]  ;;  %v1147_v3 = vld [vmem:[#allocation9 + $0x40] sm:$0xf0]  ;;  %v1017_v5 = vld [vmem:[#allocation9 + $0x20] sm:$0xf] }
  0x25   :  { %v1030_v4 = vor.u32 %v1147_v3, %v1029_v2  ;;  %v1144_v6 = vld [vmem:[#allocation9 + $0x28] sm:$0xf0]  ;;  %v1005_v8 = vld [vmem:[#allocation9 + $0x8] sm:$0xf]  ;;  %v1141_v9 = vld [vmem:[#allocation9 + $0x10] sm:$0xf0] }
  0x26   :  { %257 = vmatpush.bf16.msra.mxu0 %v1046_v27  ;;  %284 = vmatpush.bf16.msra.mxu2 %v1066_v42  ;;  %v1018_v7 = vor.u32 %v1144_v6, %v1017_v5  ;;  %v1006_v10 = vor.u32 %v1141_v9, %v1005_v8  ;;  %v1405_v11 = vld [vmem:[#allocation11] sm:$0x7]  ;;  %s1356_s3 = smov 96   ;;  %vm686_vm1 = vcmask 1043456   ;;  %vm602_vm2 = vcmask 64512   ;;  %s1357_s19 = smov [#allocation14]  }
  0x27   :  { %v121_v12 = vperm.slane %v1405_v11, 1  ;;  %v120_v13 = vperm.slane %v1405_v11, 0  ;;  %v122_v40 = vperm.slane %v1405_v11, 2  ;;  %vm857_vm3 = vcmask 523520   ;;  %s978_s20 = sshll.u32 %s1357_s19, 4  ;;  %s980_s23 = sshll.u32 %s1555_s5, 4  ;;  %s979_s20 = int_to_ptr.vmem [resolvable:$true] %s978_s20  ;;  %s981_s23 = int_to_ptr.hbm [resolvable:$true] %s980_s23 }
  0x28   :  { %272 = vmatpush.bf16.msra.mxu1 %v1038_v34  ;;  %vm863_vm4 = vcmask 785920   ;;  %vm869_vm5 = vcmask 1048320  }
  0x2a   :  { %258 = vmatpush.bf16.msra.mxu0 %v1034_v39  ;;  %285 = vmatpush.bf16.msra.mxu2 %v1054_v51 }
  0x2c   :  { %273 = vmatpush.bf16.msra.mxu1 %v1026_v43 }
  0x2e   :  { %259 = vmatpush.bf16.msra.mxu0 %v1022_v48  ;;  %286 = vmatpush.bf16.msra.mxu2 %v1042_v60 }
  0x30   :  { %274 = vmatpush.bf16.msra.mxu1 %v1014_v52 }
  0x32   :  { %260 = vmatpush.bf16.msra.mxu0 %v1010_v57  ;;  %287 = vmatpush.bf16.msra.mxu2 %v1030_v4 }
  0x34   :  { %275 = vmatpush.bf16.msra.mxu1 %v1002_v61 }
  0x36   :  { %261 = vmatpush.bf16.msra.mxu0 %v998_v0  ;;  %288 = vmatpush.bf16.msra.mxu2 %v1018_v7 }
  0x37   :  { %276 = vmatmul.bf16.vlgmr.msra.gmra.mxu1 %v85_v1 }
  0x39   :  { %262 = vmatmul.bf16.vlgmr.msra.gmra.mxu0 %v85_v1 }
  0x3a   :  { %289 = vmatpush.bf16.msra.mxu2 %v1006_v10 }
  0x3d   :  { %290 = vmatmul.bf16.vlgmr.msra.gmra.mxu2 %v85_v1 }
  0xb4   :  { %v277_v14 = vpop.f32.mrf.mxu1 }
  0xb5   :  { %v278_v15 = vadd.f32 %v277_v14, %v121_v12 }
  0xb6   :  { %v263_v16 = vpop.f32.mrf.mxu0 }
  0xb7   :  { %v264_v17 = vadd.f32 %v263_v16, %v120_v13  ;;  %298 = vst.msk [vmem:[#allocation3] sm:$0xff] %vm296_vm0, %v278_v15  ;;  %338 = vrot.lane.b32.xlu2 %v278_v15, %s1355_s2  ;;  %323 = vrot.lane.b32.xlu1 %v278_v15, %s1353_s15 }
  0xb8   :  { %307 = vrot.lane.b32.xlu0 %v278_v15, %s1356_s3 }
  0xb9   :  { %297 = vst.msk [vmem:[#allocation2] sm:$0xff] %vm296_vm0, %v264_v17 }
  0xbc   :  { %v279_v18 = vpop.f32.mrf.mxu1 }
  0xbd   :  { %v280_v19 = vadd.f32 %v279_v18, %v121_v12 }
  0xbe   :  { %v265_v20 = vpop.f32.mrf.mxu0  ;;  %v418_v21 = vld [vmem:[#allocation3] sm:$0xff] }
  0xbf   :  { %v266_v22 = vadd.f32 %v265_v20, %v120_v13  ;;  %351 = vst.msk [vmem:[#allocation3 + $0x20] sm:$0xff] %vm296_vm0, %v280_v19  ;;  %361 = vrot.lane.b32.xlu2 %v280_v19, %s1356_s3  ;;  %318 = vrot.lane.b32.xlu1 %v264_v17, %s1353_s15  ;;  %v426_v23 = vpack.c.bf16 %v418_v21, %v418_v21 }
  0xc0   :  { %301 = vrot.lane.b32.xlu0 %v264_v17, %s1356_s3  ;;  %v402_v25 = vld [vmem:[#allocation2] sm:$0xff]  ;;  %v291_v42 = vpop.f32.mrf.mxu2 }
  0xc1   :  { %349 = vst.msk [vmem:[#allocation2 + $0x20] sm:$0xff] %vm296_vm0, %v266_v22  ;;  %v454_v24 = vsel %vm296_vm0, %v426_v23, 0  ;;  %v410_v26 = vpack.c.bf16 %v402_v25, %v402_v25  ;;  %v292_v43 = vadd.f32 %v291_v42, %v122_v40 }
  0xc2   :  { %463 = vmatpush.bf16.xpose.msra.mxu3 %v454_v24 }
  0xc3   :  { %299 = vst.msk [vmem:[#allocation4] sm:$0xff] %vm296_vm0, %v292_v43 }
  0xc6   :  { %v422_v27 = vld [vmem:[#allocation3 + $0x20] sm:$0xff] }
  0xc7   :  { %355 = vrot.lane.b32.xlu2 %v266_v22, %s1356_s3  ;;  %333 = vrot.lane.b32.xlu1 %v264_v17, %s1355_s2  ;;  %v430_v28 = vpack.c.bf16 %v422_v27, %v422_v27 }
  0xc8   :  { %377 = vrot.lane.b32.xlu0 %v280_v19, %s1353_s15  ;;  %v406_v30 = vld [vmem:[#allocation2 + $0x20] sm:$0xff]  ;;  %v293_v49 = vpop.f32.mrf.mxu2 }
  0xc9   :  { %1091 = vmatmul.msk.bf16.vlgmr.msra.gmra.mxu3 %vm296_vm0, %v410_v26  ;;  %v530_v29 = vsel %vm296_vm0, %v430_v28, 0  ;;  %v414_v31 = vpack.c.bf16 %v406_v30, %v406_v30  ;;  %v1442_v50 = vadd.f32 %v293_v49, %v122_v40 }
  0xca   :  { %539 = vmatpush.bf16.xpose.msrb.mxu2 %v530_v29 }
  0xcb   :  { %353 = vst.msk [vmem:[#allocation4 + $0x20] sm:$0xff] %vm296_vm0, %v1442_v50 }
  0xcf   :  { %387 = vrot.lane.b32.xlu2 %v266_v22, %s1355_s2  ;;  %392 = vrot.lane.b32.xlu1 %v280_v19, %s1355_s2  ;;  %v434_v19 = vld [vmem:[#allocation4] sm:$0xff] }
  0xd0   :  { %372 = vrot.lane.b32.xlu0 %v266_v22, %s1353_s15  ;;  %v442_v20 = vpack.c.bf16 %v434_v19, %v434_v19 }
  0xd1   :  { %1095 = vmatmul.msk.bf16.vlgmr.msrb.gmra.mxu2 %vm296_vm0, %v414_v31 }
  0xd2   :  { %v438_v21 = vld [vmem:[#allocation4 + $0x20] sm:$0xff]  ;;  %v688_v23 = vsel %vm686_vm1, %v442_v20, 0 }
  0xd3   :  { %v446_v22 = vpack.c.bf16 %v438_v21, %v438_v21  ;;  %697 = vmatpush.bf16.msrb.mxu1 %v688_v23 }
  0xd5   :  { %v764_v24 = vsel %vm686_vm1, %v446_v22, 0 }
  0xd7   :  { %328 = vrot.lane.b32.xlu2 %v292_v43, %s1353_s15  ;;  %773 = vmatpush.bf16.msra.mxu1 %v764_v24 }
  0xd8   :  { %313 = vrot.lane.b32.xlu0 %v292_v43, %s1356_s3 }
  0xdf   :  { %343 = vrot.lane.b32.xlu2 %v292_v43, %s1355_s2 }
 0x111   :  { %v339_v32 = vpop.permute.xlu2 %338 }
 0x112   :  { %342 = vst.msk [vmem:[#allocation3 + $0x18] sm:$0xff] %vm296_vm0, %v339_v32 }
 0x119   :  { %v362_v33 = vpop.permute.xlu2 %361  ;;  %v421_v34 = vld [vmem:[#allocation3 + $0x18] sm:$0xff] }
 0x11a   :  { %365 = vst.msk [vmem:[#allocation3 + $0x28] sm:$0xff] %vm296_vm0, %v362_v33  ;;  %v429_v35 = vpack.c.bf16 %v421_v34, %v421_v34 }
 0x11c   :  { %v511_v36 = vsel %vm296_vm0, %v429_v35, 0 }
 0x11d   :  { %520 = vmatpush.bf16.xpose.msrb.mxu0 %v511_v36 }
 0x121   :  { %v356_v37 = vpop.permute.xlu2 %355  ;;  %v423_v38 = vld [vmem:[#allocation3 + $0x28] sm:$0xff] }
 0x122   :  { %359 = vst.msk [vmem:[#allocation2 + $0x28] sm:$0xff] %vm296_vm0, %v356_v37  ;;  %v431_v39 = vpack.c.bf16 %v423_v38, %v423_v38 }
 0x124   :  { %v549_v41 = vsel %vm296_vm0, %v431_v39, 0 }
 0x125   :  { %558 = vmatpush.bf16.xpose.msra.mxu2 %v549_v41 }
 0x129   :  { %v324_v44 = vpop.permute.xlu1 %323  ;;  %v388_v45 = vpop.permute.xlu2 %387  ;;  %v407_v46 = vld [vmem:[#allocation2 + $0x28] sm:$0xff] }
 0x12a   :  { %327 = vst.msk [vmem:[#allocation3 + $0x10] sm:$0xff] %vm296_vm0, %v324_v44  ;;  %v308_v47 = vpop.permute.xlu0 %307  ;;  %v415_v48 = vpack.c.bf16 %v407_v46, %v407_v46 }
 0x12b   :  { %311 = vst.msk [vmem:[#allocation3 + $0x8] sm:$0xff] %vm296_vm0, %v308_v47 }
 0x12c   :  { %391 = vst.msk [vmem:[#allocation2 + $0x38] sm:$0xff] %vm296_vm0, %v388_v45  ;;  %1096 = vmatmul.msk.bf16.vlgmr.msra.gmra.mxu2 %vm296_vm0, %v415_v48 }
 0x131   :  { %v319_v51 = vpop.permute.xlu1 %318  ;;  %v420_v52 = vld [vmem:[#allocation3 + $0x10] sm:$0xff]  ;;  %v329_v37 = vpop.permute.xlu2 %328 }
 0x132   :  { %322 = vst.msk [vmem:[#allocation2 + $0x10] sm:$0xff] %vm296_vm0, %v319_v51  ;;  %v302_v53 = vpop.permute.xlu0 %301  ;;  %v419_v54 = vld [vmem:[#allocation3 + $0x8] sm:$0xff]  ;;  %v428_v55 = vpack.c.bf16 %v420_v52, %v420_v52 }
 0x133   :  { %305 = vst.msk [vmem:[#allocation2 + $0x8] sm:$0xff] %vm296_vm0, %v302_v53  ;;  %v427_v56 = vpack.c.bf16 %v419_v54, %v419_v54  ;;  %v409_v12 = vld [vmem:[#allocation2 + $0x38] sm:$0xff] }
 0x134   :  { %v492_v57 = vsel %vm296_vm0, %v428_v55, 0  ;;  %v417_v13 = vpack.c.bf16 %v409_v12, %v409_v12  ;;  %332 = vst.msk [vmem:[#allocation4 + $0x10] sm:$0xff] %vm296_vm0, %v329_v37 }
 0x135   :  { %v473_v58 = vsel %vm296_vm0, %v427_v56, 0 }
 0x136   :  { %482 = vmatpush.bf16.xpose.msrb.mxu3 %v473_v58 }
 0x139   :  { %v334_v59 = vpop.permute.xlu1 %333  ;;  %v404_v6 = vld [vmem:[#allocation2 + $0x10] sm:$0xff]  ;;  %v344_v40 = vpop.permute.xlu2 %343 }
 0x13a   :  { %337 = vst.msk [vmem:[#allocation2 + $0x18] sm:$0xff] %vm296_vm0, %v334_v59  ;;  %v378_v60 = vpop.permute.xlu0 %377  ;;  %v403_v61 = vld [vmem:[#allocation2 + $0x8] sm:$0xff]  ;;  %v412_v9 = vpack.c.bf16 %v404_v6, %v404_v6 }
 0x13b   :  { %381 = vst.msk [vmem:[#allocation3 + $0x30] sm:$0xff] %vm296_vm0, %v378_v60  ;;  %v411_v62 = vpack.c.bf16 %v403_v61, %v403_v61  ;;  %v436_v43 = vld [vmem:[#allocation4 + $0x10] sm:$0xff] }
 0x13c   :  { %347 = vst.msk [vmem:[#allocation4 + $0x18] sm:$0xff] %vm296_vm0, %v344_v40  ;;  %v444_v45 = vpack.c.bf16 %v436_v43, %v436_v43 }
 0x13d   :  { %1092 = vmatmul.msk.bf16.vlgmr.msrb.gmra.mxu3 %vm296_vm0, %v411_v62 }
 0x13e   :  { %501 = vmatpush.bf16.xpose.msra.mxu3 %v492_v57  ;;  %v726_v47 = vsel %vm686_vm1, %v444_v45, 0 }
 0x141   :  { %v393_v63 = vpop.permute.xlu1 %392  ;;  %v405_v0 = vld [vmem:[#allocation2 + $0x18] sm:$0xff] }
 0x142   :  { %396 = vst.msk [vmem:[#allocation3 + $0x38] sm:$0xff] %vm296_vm0, %v393_v63  ;;  %v373_v1 = vpop.permute.xlu0 %372  ;;  %v413_v2 = vpack.c.bf16 %v405_v0, %v405_v0  ;;  %v424_v3 = vld [vmem:[#allocation3 + $0x30] sm:$0xff] }
 0x143   :  { %376 = vst.msk [vmem:[#allocation2 + $0x30] sm:$0xff] %vm296_vm0, %v373_v1  ;;  %v432_v4 = vpack.c.bf16 %v424_v3, %v424_v3  ;;  %v437_v44 = vld [vmem:[#allocation4 + $0x18] sm:$0xff] }
 0x144   :  { %1094 = vmatmul.msk.bf16.vlgmr.msrb.gmra.mxu0 %vm296_vm0, %v413_v2  ;;  %v445_v46 = vpack.c.bf16 %v437_v44, %v437_v44 }
 0x145   :  { %v568_v5 = vsel %vm296_vm0, %v432_v4, 0 }
 0x146   :  { %577 = vmatpush.bf16.xpose.msrb.mxu3 %v568_v5  ;;  %v745_v48 = vsel %vm686_vm1, %v445_v46, 0 }
 0x149   :  { %v425_v7 = vld [vmem:[#allocation3 + $0x38] sm:$0xff] }
 0x14a   :  { %v433_v8 = vpack.c.bf16 %v425_v7, %v425_v7  ;;  %v408_v16 = vld [vmem:[#allocation2 + $0x30] sm:$0xff]  ;;  %v314_v49 = vpop.permute.xlu0 %313 }
 0x14b   :  { %v416_v17 = vpack.c.bf16 %v408_v16, %v408_v16  ;;  %317 = vst.msk [vmem:[#allocation4 + $0x8] sm:$0xff] %vm296_vm0, %v314_v49 }
 0x14c   :  { %v1458_v10 = vpop.f32.mrf.mxu3  ;;  %v587_v11 = vsel %vm296_vm0, %v433_v8, 0 }
 0x14d   :  { %1093 = vmatmul.msk.bf16.vlgmr.msra.gmra.mxu3 %vm296_vm0, %v412_v9  ;;  %596 = vmatpush.bf16.xpose.msra.mxu0 %v587_v11  ;;  %v603_v55 = vsel %vm602_vm2, %v1458_v10, -inf }
 0x14e   :  { %735 = vmatpush.bf16.msra.mxu3 %v726_v47 }
 0x152   :  { %v435_v52 = vld [vmem:[#allocation4 + $0x8] sm:$0xff] }
 0x153   :  { %v443_v53 = vpack.c.bf16 %v435_v52, %v435_v52 }
 0x154   :  { %v1462_v14 = vpop.f32.mrf.mxu2  ;;  %1098 = vmatmul.msk.bf16.vlgmr.msra.gmra.mxu0 %vm296_vm0, %v417_v13  ;;  %v467_v15 = vpop.f32.mrf.mxu3 }
 0x155   :  { %754 = vmatpush.bf16.msrb.mxu0 %v745_v48  ;;  %v707_v54 = vsel %vm686_vm1, %v443_v53, 0  ;;  %v615_v57 = vsel %vm602_vm2, %v1462_v14, -inf }
 0x156   :  { %716 = vmatpush.bf16.msrb.mxu2 %v707_v54 }
 0x15c   :  { %v543_v18 = vpop.f32.mrf.mxu2 }
 0x15d   :  { %1097 = vmatmul.msk.bf16.vlgmr.msrb.gmra.mxu3 %vm296_vm0, %v416_v17 }
 0x1af   :  { %v1468_v25 = vpop.f32.mrf.mxu2 }
 0x1b0   :  { %v618_v26 = vsel %vm602_vm2, %v1468_v25, -inf }
 0x1b1   :  { %619 = vmax.xlane.f32.xlu0 %v618_v26 }
 0x1b7   :  { %v562_v27 = vpop.f32.mrf.mxu2 }
 0x1c0   :  { %v484_v28 = vpop.f32.mrf.mxu3 }
 0x1c1   :  { %v522_v29 = vpop.f32.mrf.mxu0  ;;  %v606_v30 = vsel %vm602_vm2, %v484_v28, -inf }
 0x1c2   :  { %607 = vmax.xlane.f32.xlu1 %v606_v30  ;;  %v612_v31 = vsel %vm602_vm2, %v522_v29, -inf }
 0x1c3   :  { %613 = vmax.xlane.f32.xlu2 %v612_v31 }
 0x1c8   :  { %v486_v32 = vpop.f32.mrf.mxu3 }
 0x1c9   :  { %v524_v33 = vpop.f32.mrf.mxu0 }
 0x1d0   :  { %v503_v34 = vpop.f32.mrf.mxu3 }
 0x1d1   :  { %v1474_v35 = vpop.f32.mrf.mxu0  ;;  %v609_v36 = vsel %vm602_vm2, %v503_v34, -inf }
 0x1d2   :  { %610 = vmax.xlane.f32.xlu0 %v609_v36  ;;  %v624_v56 = vsel %vm602_vm2, %v1474_v35, -inf }
 0x1d8   :  { %v505_v38 = vpop.f32.mrf.mxu3 }
 0x1d9   :  { %v600_v39 = vpop.f32.mrf.mxu0 }
 0x1db   :  { %367 = vrot.lane.b32.xlu1 %v1442_v50, %s1356_s3  ;;  %382 = vrot.lane.b32.xlu2 %v1442_v50, %s1353_s15 }
 0x1e0   :  { %v1483_v41 = vpop.f32.mrf.mxu3 }
 0x1e1   :  { %v621_v42 = vsel %vm602_vm2, %v1483_v41, -inf }
 0x1e2   :  { %622 = vmax.xlane.f32.xlu0 %v621_v42 }
 0x1e8   :  { %v581_v51 = vpop.f32.mrf.mxu3 }
 0x1f6   :  { %397 = vrot.lane.b32.xlu0 %v1442_v50, %s1355_s2 }
 0x204   :  { %604 = vmax.xlane.f32.xlu2 %v603_v55 }
 0x205   :  { %625 = vmax.xlane.f32.xlu1 %v624_v56 }
 0x220   :  { %616 = vmax.xlane.f32.xlu0 %v615_v57 }
 0x224   :  { %v620_v63 = vpop.xlane.xlu0 %619 }
 0x225   :  { %v632_v11 = vsub.f32 %v1468_v25, %v620_v63 }
 0x227   :  { %v645_v13 = vmul.f32 1.442695, %v632_v11 }
 0x235   :  { %v608_v58 = vpop.xlane.xlu1 %607 }
 0x236   :  { %v628_v59 = vsub.f32 %v484_v28, %v608_v58  ;;  %v614_v50 = vpop.xlane.xlu2 %613 }
 0x237   :  { %v630_v60 = vsub.f32 %v522_v29, %v614_v50 }
 0x238   :  { %v637_v61 = vmul.f32 1.442695, %v628_v59 }
 0x239   :  { %v641_v62 = vmul.f32 1.442695, %v630_v60 }
 0x23a   :  { %1185 = vpow2.f32 %v637_v61 }
 0x23b   :  { %1187 = vpow2.f32 %v641_v62 }
 0x23e   :  { %v383_v0 = vpop.permute.xlu2 %382 }
 0x23f   :  { %386 = vst.msk [vmem:[#allocation4 + $0x30] sm:$0xff] %vm296_vm0, %v383_v0 }
 0x240   :  { %v1186_v1 = vpop.eup %1185 }
 0x241   :  { %v1500_v2 = vpop.eup %1187  ;;  %v676_v3 = vpack.c.bf16 %v1186_v1, %v1186_v1 }
 0x242   :  { %v678_v4 = vpack.c.bf16 %v1500_v2, %v1500_v2  ;;  %v660_v54 = vsel %vm602_vm2, %v1500_v2, 0.0 }
 0x243   :  { %1100 = vmatmul.msk.bf16.vlgmr.msrb.gmra.mxu2 %vm602_vm2, %v676_v3 }
 0x244   :  { %1102 = vmatmul.msk.bf16.vlgmr.msrb.gmra.mxu0 %vm602_vm2, %v678_v4 }
 0x245   :  { %v611_v5 = vpop.xlane.xlu0 %610 }
 0x246   :  { %v629_v6 = vsub.f32 %v503_v34, %v611_v5  ;;  %v440_v7 = vld [vmem:[#allocation4 + $0x30] sm:$0xff] }
 0x247   :  { %v448_v8 = vpack.c.bf16 %v440_v7, %v440_v7 }
 0x248   :  { %v639_v9 = vmul.f32 1.442695, %v629_v6 }
 0x249   :  { %v802_v12 = vsel %vm686_vm1, %v448_v8, 0 }
 0x24a   :  { %1189 = vpow2.f32 %v639_v9  ;;  %811 = vmatpush.bf16.msrb.mxu3 %v802_v12 }
 0x24b   :  { %1191 = vpow2.f32 %v645_v13 }
 0x24d   :  { %v368_v15 = vpop.permute.xlu1 %367 }
 0x24e   :  { %371 = vst.msk [vmem:[#allocation4 + $0x28] sm:$0xff] %vm296_vm0, %v368_v15 }
 0x250   :  { %v1190_v16 = vpop.eup %1189 }
 0x251   :  { %v677_v17 = vpack.c.bf16 %v1190_v16, %v1190_v16  ;;  %v1192_v22 = vpop.eup %1191 }
 0x252   :  { %v680_v25 = vpack.c.bf16 %v1192_v22, %v1192_v22  ;;  %v666_v46 = vsel %vm602_vm2, %v1192_v22, 0.0 }
 0x253   :  { %1101 = vmatmul.msk.bf16.vlgmr.msra.gmra.mxu3 %vm602_vm2, %v677_v17 }
 0x255   :  { %v623_v18 = vpop.xlane.xlu0 %622  ;;  %v439_v19 = vld [vmem:[#allocation4 + $0x28] sm:$0xff] }
 0x256   :  { %v633_v20 = vsub.f32 %v1483_v41, %v623_v18  ;;  %v447_v21 = vpack.c.bf16 %v439_v19, %v439_v19 }
 0x258   :  { %v647_v23 = vmul.f32 1.442695, %v633_v20  ;;  %v783_v24 = vsel %vm686_vm1, %v447_v21, 0 }
 0x259   :  { %792 = vmatpush.bf16.msra.mxu2 %v783_v24 }
 0x25a   :  { %1193 = vpow2.f32 %v647_v23 }
 0x25c   :  { %1104 = vmatmul.msk.bf16.vlgmr.msra.gmra.mxu2 %vm602_vm2, %v680_v25 }
 0x260   :  { %v1194_v26 = vpop.eup %1193 }
 0x261   :  { %v681_v27 = vpack.c.bf16 %v1194_v26, %v1194_v26  ;;  %v669_v49 = vsel %vm602_vm2, %v1194_v26, 0.0 }
 0x263   :  { %1105 = vmatmul.msk.bf16.vlgmr.msrb.gmra.mxu3 %vm602_vm2, %v681_v27 }
 0x268   :  { %v398_v28 = vpop.permute.xlu0 %397 }
 0x269   :  { %401 = vst.msk [vmem:[#allocation4 + $0x38] sm:$0xff] %vm296_vm0, %v398_v28 }
 0x270   :  { %v441_v29 = vld [vmem:[#allocation4 + $0x38] sm:$0xff] }
 0x271   :  { %v449_v30 = vpack.c.bf16 %v441_v29, %v441_v29 }
 0x273   :  { %v821_v31 = vsel %vm686_vm1, %v449_v30, 0 }
 0x274   :  { %830 = vmatpush.bf16.msra.mxu0 %v821_v31  ;;  %v1170_v31 = vld [vmem:[#allocation12 + $0x38] sm:$0xff] }
 0x277   :  { %v605_v32 = vpop.xlane.xlu2 %604 }
 0x278   :  { %v627_v33 = vsub.f32 %v1458_v10, %v605_v32  ;;  %v626_v34 = vpop.xlane.xlu1 %625  ;;  %v654_v10 = vsel %vm602_vm2, %v1186_v1, 0.0 }
 0x279   :  { %v634_v36 = vsub.f32 %v1474_v35, %v626_v34  ;;  %v657_v35 = vsel %vm602_vm2, %v1190_v16, 0.0  ;;  %v1168_v34 = vld [vmem:[#allocation12 + $0x28] sm:$0xff] }
 0x27a   :  { %v635_v37 = vmul.f32 1.442695, %v627_v33  ;;  %v1169_v33 = vld [vmem:[#allocation12 + $0x30] sm:$0xff] }
 0x27b   :  { %v649_v38 = vmul.f32 1.442695, %v634_v36  ;;  %v1167_v36 = vld [vmem:[#allocation12 + $0x20] sm:$0xff] }
 0x27c   :  { %1195 = vpow2.f32 %v635_v37  ;;  %v1166_v37 = vld [vmem:[#allocation12 + $0x18] sm:$0xff] }
 0x27d   :  { %1197 = vpow2.f32 %v649_v38  ;;  %v1165_v38 = vld [vmem:[#allocation12 + $0x10] sm:$0xff] }
 0x282   :  { %v1196_v39 = vpop.eup %1195 }
 0x283   :  { %v1198_v40 = vpop.eup %1197  ;;  %v651_v41 = vsel %vm602_vm2, %v1196_v39, 0.0  ;;  %v675_v42 = vpack.c.bf16 %v1196_v39, %v1196_v39  ;;  %v1164_v39 = vld [vmem:[#allocation12 + $0x8] sm:$0xff] }
 0x284   :  { %v682_v43 = vpack.c.bf16 %v1198_v40, %v1198_v40  ;;  %652 = vadd.xlane.f32.xlu1 %v651_v41  ;;  %v672_v44 = vsel %vm602_vm2, %v1198_v40, 0.0  ;;  %v1163_v40 = vld [vmem:[#allocation12] sm:$0xff] }
 0x285   :  { %673 = vadd.xlane.f32.xlu2 %v672_v44  ;;  %1099 = vmatmul.msk.bf16.vlgmr.msrb.gmra.mxu1 %vm602_vm2, %v675_v42 }
 0x286   :  { %1106 = vmatmul.msk.bf16.vlgmr.msra.gmra.mxu0 %vm602_vm2, %v682_v43  ;;  %958 = vmatpush.bf16.msrb.mxu1 %v1170_v31 }
 0x28a   :  { %959 = vmatpush.bf16.msrb.mxu1 %v1169_v33 }
 0x28c   :  { %655 = vadd.xlane.f32.xlu1 %v654_v10 }
 0x28d   :  { %658 = vadd.xlane.f32.xlu2 %v657_v35 }
 0x28e   :  { %960 = vmatpush.bf16.msrb.mxu1 %v1168_v34 }
 0x292   :  { %961 = vmatpush.bf16.msrb.mxu1 %v1167_v36 }
 0x293   :  { %v617_v45 = vpop.xlane.xlu0 %616 }
 0x294   :  { %v631_v47 = vsub.f32 %v1462_v14, %v617_v45  ;;  %667 = vadd.xlane.f32.xlu1 %v666_v46 }
 0x296   :  { %v643_v48 = vmul.f32 1.442695, %v631_v47  ;;  %962 = vmatpush.bf16.msrb.mxu1 %v1166_v37  ;;  %v1184_v47 = vld [vmem:[%s1554_s4] ss:$0 sm:$0xff] }
 0x298   :  { %1199 = vpow2.f32 %v643_v48 }
 0x29a   :  { %963 = vmatpush.bf16.msrb.mxu1 %v1165_v38 }
 0x29c   :  { %670 = vadd.xlane.f32.xlu1 %v669_v49 }
 0x29e   :  { %v1200_v51 = vpop.eup %1199  ;;  %964 = vmatpush.bf16.msrb.mxu1 %v1164_v39 }
 0x29f   :  { %v679_v52 = vpack.c.bf16 %v1200_v51, %v1200_v51  ;;  %v663_v53 = vsel %vm602_vm2, %v1200_v51, 0.0 }
 0x2a0   :  { %664 = vadd.xlane.f32.xlu0 %v663_v53 }
 0x2a1   :  { %1103 = vmatmul.msk.bf16.vlgmr.msra.gmra.mxu1 %vm602_vm2, %v679_v52 }
 0x2a2   :  { %965 = vmatpush.bf16.msrb.mxu1 %v1163_v40 }
 0x2a8   :  { %661 = vadd.xlane.f32.xlu0 %v660_v54 }
 0x2c1   :  { %v756_v55 = vpop.f32.mrf.mxu0 }
 0x2c6   :  { %v718_v56 = vpop.f32.mrf.mxu2 }
 0x2c9   :  { %v758_v14 = vpop.f32.mrf.mxu0 }
 0x2ce   :  { %v720_v57 = vpop.f32.mrf.mxu2 }
 0x2d6   :  { %v737_v58 = vpop.f32.mrf.mxu3 }
 0x2de   :  { %v739_v59 = vpop.f32.mrf.mxu3 }
 0x2df   :  { %v794_v50 = vpop.f32.mrf.mxu2 }
 0x2e6   :  { %v813_v60 = vpop.f32.mrf.mxu3 }
 0x2e7   :  { %v796_v61 = vpop.f32.mrf.mxu2 }
 0x2ee   :  { %v815_v62 = vpop.f32.mrf.mxu3 }
 0x2f7   :  { %v653_v63 = vpop.xlane.xlu1 %652 }
 0x2f8   :  { %v674_v0 = vpop.xlane.xlu2 %673  ;;  %1201 = vrcp.f32 %v653_v63 }
 0x2fe   :  { %v1202_v4 = vpop.eup %1201 }
 0x2ff   :  { %v656_v1 = vpop.xlane.xlu1 %655 }
 0x300   :  { %1203 = vrcp.f32 %v656_v1  ;;  %v659_v3 = vpop.xlane.xlu2 %658 }
 0x301   :  { %1205 = vrcp.f32 %v659_v3 }
 0x302   :  { %v699_v2 = vpop.f32.mrf.mxu1 }
 0x303   :  { %v844_v5 = vmul.f32 %v1202_v4, %v699_v2  ;;  %v832_v6 = vpop.f32.mrf.mxu0 }
 0x305   :  { %852 = vst.msk [vmem:[#allocation5] sm:$0xff] %vm296_vm0, %v844_v5 }
 0x306   :  { %v1204_v7 = vpop.eup %1203 }
 0x307   :  { %v1206_v8 = vpop.eup %1205  ;;  %v668_v9 = vpop.xlane.xlu1 %667  ;;  %v845_v11 = vmul.f32 %v1204_v7, %v718_v56 }
 0x308   :  { %1207 = vrcp.f32 %v668_v9  ;;  %v846_v12 = vmul.f32 %v1206_v8, %v737_v58 }
 0x309   :  { %854 = vrot.lane.b32.xlu2 %v845_v11, %s1355_s2  ;;  %1209 = vrcp.f32 %v674_v0 }
 0x30a   :  { %860 = vrot.lane.b32.xlu0 %v846_v12, %s1353_s15  ;;  %v701_v13 = vpop.f32.mrf.mxu1 }
 0x30b   :  { %v834_v15 = vpop.f32.mrf.mxu0 }
 0x30e   :  { %v1208_v16 = vpop.eup %1207 }
 0x30f   :  { %v671_v17 = vpop.xlane.xlu1 %670  ;;  %v849_v18 = vmul.f32 %v1208_v16, %v794_v50  ;;  %v1210_v20 = vpop.eup %1209 }
 0x310   :  { %1211 = vrcp.f32 %v671_v17  ;;  %v851_v22 = vmul.f32 %v1210_v20, %v832_v6 }
 0x311   :  { %873 = vrot.lane.b32.xlu1 %v849_v18, %s1355_s2 }
 0x313   :  { %v665_v19 = vpop.xlane.xlu0 %664 }
 0x314   :  { %1213 = vrcp.f32 %v665_v19 }
 0x316   :  { %v1212_v21 = vpop.eup %1211 }
 0x317   :  { %v850_v23 = vmul.f32 %v1212_v21, %v813_v60 }
 0x319   :  { %883 = vrot.lane.b32.xlu1 %v851_v22, %s1356_s3  ;;  %878 = vrot.lane.b32.xlu2 %v850_v23, %s1353_s15 }
 0x31a   :  { %v1214_v25 = vpop.eup %1213 }
 0x31b   :  { %v662_v24 = vpop.xlane.xlu0 %661 }
 0x31c   :  { %1215 = vrcp.f32 %v662_v24 }
 0x31e   :  { %v775_v26 = vpop.f32.mrf.mxu1 }
 0x31f   :  { %v848_v27 = vmul.f32 %v1214_v25, %v775_v26 }
 0x321   :  { %871 = vst.msk [vmem:[#allocation5 + $0x8] sm:$0xff] %vm296_vm0, %v848_v27 }
 0x322   :  { %v1216_v28 = vpop.eup %1215 }
 0x323   :  { %v847_v29 = vmul.f32 %v1216_v28, %v756_v55 }
 0x325   :  { %866 = vrot.lane.b32.xlu0 %v847_v29, %s1356_s3 }
 0x326   :  { %v777_v30 = vpop.f32.mrf.mxu1 }
 0x363   :  { %v855_v32 = vpop.permute.xlu2 %854 }
 0x364   :  { %858 = vst.msk [vmem:[#allocation5] sm:$0xff] %vm857_vm3, %v855_v32 }
 0x373   :  { %v879_v43 = vpop.permute.xlu2 %878 }
 0x37c   :  { %v861_v41 = vpop.permute.xlu0 %860 }
 0x37d   :  { %864 = vst.msk [vmem:[#allocation5] sm:$0xff] %vm863_vm4, %v861_v41 }
 0x383   :  { %v874_v42 = vpop.permute.xlu1 %873 }
 0x384   :  { %876 = vst.msk [vmem:[#allocation5 + $0x8] sm:$0xff] %vm857_vm3, %v874_v42 }
 0x385   :  { %881 = vst.msk [vmem:[#allocation5 + $0x8] sm:$0xff] %vm863_vm4, %v879_v43 }
 0x38b   :  { %v884_v44 = vpop.permute.xlu1 %883 }
 0x38c   :  { %886 = vst.msk [vmem:[#allocation5 + $0x8] sm:$0xff] %vm869_vm5, %v884_v44 }
 0x393   :  { %v888_v45 = vld [vmem:[#allocation5 + $0x8] sm:$0xff] }
 0x397   :  { %v867_v10 = vpop.permute.xlu0 %866 }
 0x398   :  { %870 = vst.msk [vmem:[#allocation5] sm:$0xff] %vm869_vm5, %v867_v10 }
 0x39f   :  { %v887_v35 = vld [vmem:[#allocation5] sm:$0xff] }
 0x3a0   :  { %v889_v46 = vpack.c.bf16 %v888_v45, %v887_v35 }
 0x3a2   :  { %966 = vmatmul.bf16.vlgmr.msrb.gmra.mxu1 %v889_v46 }
 0x41f   :  { %v967_v48 = vpop.f32.mrf.mxu1 }
 0x420   :  { %v968_v49 = vadd.f32 %v1184_v47, %v967_v48 }
 0x422   :  { %972 = vst [vmem:[#allocation14] sm:$0xff] %v968_v49 }
 0x427   :  { %v969_v51 = vpop.f32.mrf.mxu1 }
 0x428   :  { %v970_v52 = vadd.f32 %v1184_v47, %v969_v51 }
 0x42a   :  { %973 = vst [vmem:[#allocation14 + $0x8] sm:$0xff] %v970_v52 }
 0x42b   :  { %986 = dma.vmem_to_hbm [thread:$0]  %s979_s20, 256, %s981_s23, [#allocation8], %s1349_s30, %s1349_s30, %s1350_s6  }
 0x42c   :  { %1343 = dma.done.wait [#allocation8], 256  }
 0x42d   :  { %1344 = vsyncadd [#allocation8], 4294967040 }
 0x42e   :  { %991 = vsyncpa [#allocation7], 1 }
 0x42f   :  { %992 = vsyncpa [#allocation10], 1 }
 0x430   :  { %993 = vsyncpa [#allocation13], 1 }
 0x431   :  { %994 = vsyncpa [#allocation8], 1 }

</bundles_post_ra>
